<compile_context>
chip_gen: v5e
topology: v5e:2x2
jax: 0.10.0
libtpu: 0.0.40
codegen_flags: <defaults>
</compile_context>

<pallas_src>
import math

import jax
import jax.numpy as jnp
from jax.experimental import pallas as pl
from jax.experimental.pallas import tpu as pltpu


def _round_up(x, m):
    return ((x + m - 1) // m) * m


def _round_down(x, m):
    return (x // m) * m


def _vmem_budget_bytes():
    """Per-TensorCore VMEM capacity; conservative fallback = v7x (64 MiB)."""
    try:
        return int(pltpu.get_tpu_info().vmem_capacity_bytes)
    except Exception:
        return 64 * 1024 * 1024


def _discriminator_kernel(ws_ref, feat_ref, out_ref):
    # ws_ref:   [G, G*H]   block-diagonal replication of (W @ summary); tiny,
    #                      same block every grid step (resident).
    # feat_ref: [T, G*H]   streamed packed feature-row tile.
    # out_ref:  [G, T]     lane-dense score tile: out[j, t] = score of original
    #                      row (tile_offset + t) * G + j.
    scores = jax.lax.dot_general(
        ws_ref[...],
        feat_ref[...],
        dimension_numbers=(((1,), (1,)), ((), ())),  # contract packed hidden dim (A @ B^T)
        preferred_element_type=jnp.float32,
    )                                                # -> [G, T]
    out_ref[...] = scores.astype(out_ref.dtype)


def discriminator_forward(features, weight, summary):
    """features: [N, H], weight: [H, H], summary: [H]  ->  scores: [N]."""
    n, h = features.shape
    assert weight.shape == (h, h)
    assert summary.shape == (h,)
    out_dtype = features.dtype
    itemsize = jnp.dtype(features.dtype).itemsize

    # Hoist the tiny GEMV out of the kernel: ws = W @ summary  -> [H].
    ws = jnp.dot(weight, summary, preferred_element_type=jnp.float32)
    ws_vec = ws.astype(features.dtype)

    # ---- lane packing for narrow hidden dims (H < 128) ----------------------
    g = max(1, 128 // h) if h < 128 else 1
    n_main = (n // g) * g          # rows handled by the Pallas kernel
    n_rows = n_main // g           # packed rows streamed by the kernel

    if n_rows == 0:
        # Fewer than g rows total: plain XLA is both correct and fastest.
        return jnp.dot(features, ws_vec,
                       preferred_element_type=jnp.float32).astype(out_dtype)

    if g > 1:
        # Block-diagonal [g, g*H]: row j holds ws at columns [j*H, (j+1)*H).
        ws_mat = jnp.kron(jnp.eye(g, dtype=jnp.float32), ws[None, :])
    else:
        ws_mat = ws[None, :]
    ws_mat = ws_mat.astype(features.dtype)

    feat_packed = features[:n_main].reshape(n_rows, g * h)

    # ---- adaptive tile sizing (bandwidth-bound streaming) --------------------
    row_bytes = g * h * itemsize
    vmem_budget = _vmem_budget_bytes()
    # ~16 MiB blocks on 128-MiB-VMEM chips (v5e/v6e), ~8 MiB on v7x (64 MiB),
    # and never more than 1/4 of the budget per buffer (double-buffered input).
    target_bytes = min(16 << 20 if vmem_budget >= 96 * 1024 * 1024 else 8 << 20,
                       vmem_budget // 4)
    # TODO(synk): for H so large that a single 128-row block exceeds the VMEM
    # budget, add a second "arbitrary" grid axis over H with an f32 accumulator.
    tile_rows = max(128, _round_down(max(1, target_bytes // row_bytes), 128))
    if n_rows > 128:
        # Guarantee >= 2 grid steps so "parallel" can shard across both
        # TensorCores on v7x (harmless on single-core v5e/v6e).
        tile_rows = min(tile_rows, max(128, _round_up(-(-n_rows // 2), 128)))
    else:
        tile_rows = n_rows          # single full-extent block, no constraints
    num_tiles = (n_rows + tile_rows - 1) // tile_rows

    # Derived VMEM limit: double-buffered features + ws + output, plus headroom.
    needed = (2 * tile_rows * row_bytes
              + 2 * g * (g * h) * itemsize
              + 2 * g * tile_rows * jnp.dtype(out_dtype).itemsize)
    vmem_limit = int(min(vmem_budget, max(needed + (4 << 20), 32 << 20)))

    out = pl.pallas_call(
        _discriminator_kernel,
        grid=(num_tiles,),
        out_shape=jax.ShapeDtypeStruct((g, num_tiles * tile_rows), out_dtype),
        in_specs=[
            pl.BlockSpec((g, g * h), lambda i: (0, 0)),          # ws (resident)
            pl.BlockSpec((tile_rows, g * h), lambda i: (i, 0)),  # streamed rows
        ],
        out_specs=pl.BlockSpec((g, tile_rows), lambda i: (0, i)),
        compiler_params=pltpu.CompilerParams(
            dimension_semantics=("parallel",),
            vmem_limit_bytes=vmem_limit,
        ),
    )(ws_mat, feat_packed)

    # out[j, p] = score of original row p*g + j; transpose+flatten restores row
    # order.  Slicing to n_main discards the lanes produced from the (possibly
    # garbage) overhanging rows of the last input block.
    scores_main = out.T.reshape(-1)[:n_main]

    if n_main == n:
        return scores_main.astype(out_dtype)
    # Ragged tail (< g rows): tiny plain-XLA GEMV.
    tail = jnp.dot(features[n_main:], ws_vec, preferred_element_type=jnp.float32)
    return jnp.concatenate([scores_main, tail.astype(out_dtype)]).astype(out_dtype)


if __name__ == "__main__":
    key = jax.random.PRNGKey(0)
    k_w, k_f, k_s = jax.random.split(key, 3)

    n_hidden = 32
    n_nodes = 1000   # not a multiple of the packed tile -> exercises the overhang path

    # Deterministic parameter init mirroring reset_parameters():
    # uniform(-1/sqrt(n_hidden), 1/sqrt(n_hidden))
    bound = 1.0 / math.sqrt(n_hidden)
    weight = jax.random.uniform(
        k_w, (n_hidden, n_hidden), minval=-bound, maxval=bound, dtype=jnp.float32
    )
    features = jax.random.normal(k_f, (n_nodes, n_hidden), dtype=jnp.float32)
    summary = jax.random.normal(k_s, (n_hidden,), dtype=jnp.float32)

    out = discriminator_forward(features, weight, summary)
    out = jax.block_until_ready(out)

    # Reference check (plain JAX) for correctness.
    ref = features @ (weight @ summary)
    assert out.shape == (n_nodes,)
    assert jnp.allclose(out, ref, atol=1e-4, rtol=1e-4), float(
        jnp.max(jnp.abs(out - ref))
    )

    print("KERNEL_OK")
</pallas_src>

<mosaic_0001>
module attributes {stable_mosaic.version = 11 : i64} {
  func.func @_discriminator_kernel(%arg0: i32, %arg1: memref<4x128xf32, #tpu.memory_space<vmem>>, %arg2: memref<128x128xf32, #tpu.memory_space<vmem>>, %arg3: memref<4x128xf32, #tpu.memory_space<vmem>>) attributes {dimension_semantics = [#tpu.dimension_semantics<parallel>], iteration_bounds = array<i64: 2>, scalar_prefetch = 0 : i64, scratch_operands = 0 : i64, tpu.core_type = #tpu.core_type<tc>, window_params = [{pipeline_mode = #tpu.pipeline_mode<synchronous>, transform_indices = @transform_0, window_bounds = array<i64: 4, 128>}, {transform_indices = @transform_1, window_bounds = array<i64: 128, 128>}, {transform_indices = @transform_2, window_bounds = array<i64: 4, 128>}]} {
    %c0 = arith.constant 0 : index
    %c0_0 = arith.constant 0 : index
    %0 = vector.load %arg1[%c0, %c0_0] : memref<4x128xf32, #tpu.memory_space<vmem>>, vector<4x128xf32>
    %c0_1 = arith.constant 0 : index
    %c0_2 = arith.constant 0 : index
    %1 = vector.load %arg2[%c0_1, %c0_2] : memref<128x128xf32, #tpu.memory_space<vmem>>, vector<128x128xf32>
    %cst = arith.constant dense<0.000000e+00> : vector<4x128xf32>
    %2 = tpu.matmul %0, %1, %cst {dimension_numbers = #tpu.dot_dimension_numbers<[1], [1], [0], [0], [0, 0, 1, 0], [], []>} : vector<4x128xf32>, vector<128x128xf32>, vector<4x128xf32> -> vector<4x128xf32>
    %c0_3 = arith.constant 0 : index
    %c0_4 = arith.constant 0 : index
    %3 = vector.load %arg3[%c0_3, %c0_4] : memref<4x128xf32, #tpu.memory_space<vmem>>, vector<4x128xf32>
    tpu.vector_store %arg3[%c0_3, %c0_4], %2 {strides = array<i32>} : memref<4x128xf32, #tpu.memory_space<vmem>>, vector<4x128xf32>,
    return
  }
  func.func @transform_0(%arg0: i32) -> (i32, i32) {
    %c0_i32 = arith.constant 0 : i32
    %c0_i32_0 = arith.constant 0 : i32
    %c0_i32_1 = arith.constant 0 : i32
    return %c0_i32, %c0_i32_0 : i32, i32
  }
  func.func @transform_1(%arg0: i32) -> (i32, i32) {
    %c0_i32 = arith.constant 0 : i32
    %c0_i32_0 = arith.constant 0 : i32
    return %arg0, %c0_i32 : i32, i32
  }
  func.func @transform_2(%arg0: i32) -> (i32, i32) {
    %c0_i32 = arith.constant 0 : i32
    %c0_i32_0 = arith.constant 0 : i32
    return %c0_i32, %arg0 : i32, i32
  }
}

</mosaic_0001>

<bundles_post_ra>
// kernel: tpu_custom_call.1
= control target key start
LH: loop header
LB: loop body
LE: loop exit
PB: predicated region body
PF: predicated region fallthrough
CT: control target
= control target key end

     0   :  { %7 = vsyncpa [#allocation3], 0  ;;  %s702_s0 = inlined_call_operand.hbm [shape: f32[4,128], index: 0, kind: input, shape index: {}]   ;;  %s703_s1 = inlined_call_operand.hbm [shape: f32[250,128], index: 1, kind: input, shape index: {}]   ;;  %s704_s2 = inlined_call_operand.hbm [shape: f32[4,256], index: 2, kind: output, shape index: {}]  }
   0x1   :  { %8 = vsyncpa [#allocation6], 0 }
   0x2   :  { %10 = vsyncpa [#allocation6 + $0x1], 0 }
   0x3   :  { %11 = vsyncpa [#allocation4], 0 }
   0x4   :  { %13 = vsyncpa [#allocation4 + $0x1], 0  ;;  %s541_s9 = smov 0   ;;  %s543_s10 = smov 0  }
   0x5   :  { %s545_s11 = smov 0   ;;  %s547_s12 = smov 0  }
   0x6 LB: > { %s562_s13 = sadd.s32 4294967295, %s521_s12   ;;  %s316_s14 = sadd.s32 4294967294, %s521_s12   ;;  %s521_s12 = sphi %s547_s12, %s715_s12   ;;  %s517_s11 = sphi %s545_s11, %s714_s11   ;;  %s513_s10 = sphi %s543_s10, %s713_s10   ;;  %s509_s9 = sphi %s541_s9, %s712_s9  }
   0x7   : > { %s566_s15 = sadd.s32 1, %s521_s12   ;;  %s47_s16 = sadd.s32 1, %s517_s11 }
   0x8   : > { %s44_s17 = ssub.s32 %s521_s12, %s566_s15  ;;  %p54_p0 = scmp.ne.s32.totalorder %s517_s11, %s513_s10 }
   0x9   : > { %p45_p1 = scmp.eq.s32.totalorder %s44_s17, 0  ;;  %p55_p2 = scmp.eq.s32.totalorder %s521_s12, 0 }
   0xa   : > { %p60_p3 = scmp.ne.s32.totalorder %s513_s10, %s509_s9  ;;  %p61_p4 = scmp.eq.s32.totalorder %s562_s13, 0 }
   0xb   : > { %s578_s18 = scalar_select %p45_p1, %s517_s11, %s47_s16  }
   0xc   : > { %p580_p5 = por %p55_p2, %p54_p0  ;;  %p586_p6 = por %p61_p4, %p60_p3 }
   0xd   : > { %p84_p7 = scmp.eq.s32.totalorder %s562_s13, 1  ;;  %p90_p8 = scmp.eq.s32.totalorder %s316_s14, 1 }
   0xe   : > { %p317_p9 = scmp.ge.s32.totalorder %s521_s12, 1  ;;  %p97_p10 = scmp.lt.s32.totalorder %s521_s12, 3 }
   0xf   : > { %p593_p11 = por %p84_p7, %p54_p0  ;;  %p597_p12 = por %p90_p8, %p60_p3 }
  0x10   : > { %p601_p13 = pnand %p317_p9, %p97_p10  ;;  %s109_s26 = sshll.u32 %s702_s0, 4  ;;  %s110_s26 = int_to_ptr.hbm [resolvable:$true] %s109_s26 }
  0x11   : > { %s523_s27 = smov [#allocation2]   ;;  %p353_p3 = scmp.lt.s32.totalorder %s521_s12, 2 }
  0x12   : > { %p340_p1 = pneg %p601_p13  ;;  %s111_s28 = sshll.u32 %s523_s27, 4  ;;  %s112_s28 = int_to_ptr.vmem [resolvable:$true] %s111_s28 }
  0x13   : > { %s122_s29 = sand.u32 1, %s517_s11   ;;  %p617_p7 = pnand %p353_p3, %p580_p5 }
  0x14   : > { %p341_p2 = pnand %p340_p1, %p61_p4  ;;  %s320_s3 = sshll.u32 %s122_s29, 7 }
  0x15   : > { %s331_s4 = sshll.u32 %s521_s12, 7  ;;  %s126_s14 = scalar_lea.vmem [#allocation5], %s320_s3 }
  0x16   : > { %343 = dma.hbm_to_vmem [thread:$0]  (!%p341_p2), %s110_s26, 64, %s112_s28, [#allocation3]  }
  0x17   : > { %s131_s7 = scalar_lea.hbm %s703_s1, %s331_s4  ;;  %s134_s16 = sshll.u32 %s126_s14, 4  ;;  %s135_s16 = int_to_ptr.vmem [resolvable:$true] %s134_s16 }
  0x18   : > { %s132_s8 = sshll.u32 %s131_s7, 4  ;;  %s123_s17 = scalar_lea.sflag [#allocation6], %s122_s29  ;;  %s133_s8 = int_to_ptr.hbm [resolvable:$true] %s132_s8 }
  0x19   : > { %s421_s24 = sshra.s32 %s133_s8, 4  ;;  %p425_p8 = pneg %p617_p7  ;;  %s422_s24 = int_to_ptr.hbm [resolvable:$true] %s421_s24 }
  0x1a   : > { %s423_s19 = scalar_lea.hbm %s422_s24, 128  ;;  %s428_s27 = scalar_lea.hbm %s703_s1, 256 }
  0x1b   : > { %p424_p5 = scmp.ne.s32.totalorder %s422_s24, %s423_s19  ;;  %p429_p1 = scmp.lt.s32.totalorder %s422_s24, %s703_s1 }
  0x1c   : > { %p430_p2 = scmp.lt.s32.totalorder %s428_s27, %s423_s19 }
  0x1d   : > { %p426_p9 = pnand %p425_p8, %p424_p5 }
  0x1e   : > { %p431_p3 = por %p430_p2, %p429_p1 }
  0x1f   : > { %p427_p10 = pneg %p426_p9 }
  0x21   : > { %p432_p0 = pnand %p431_p3, %p427_p10 }
  0x23   : > { %435 = shalt.err (!%p432_p0)
}
  0x24   : > { %s524_s29 = smov 128   ;;  %s525_s3 = smov 8  }
  0x25   : > { %347 = dma.hbm_to_vmem [thread:$0]  (!%p617_p7), %s133_s8, 2048, %s135_s16, %s123_s17, %s524_s29, %s524_s29, %s525_s3  }
  0x26   : > { %146 = sbr.rel (%p601_p13) target bundleno = 241 (0xf1), region = 28 }
  0x2b   : > { %496 = dma.done.wait (%p61_p4), [#allocation3], 64  }
  0x2c   : > { %498 = vsyncadd (%p61_p4), [#allocation3], 4294967232  ;;  %s642_s5 = sand.u32 1, %s513_s10  }
  0x2d   : > { %s325_s6 = sshll.u32 %s642_s5, 7  ;;  %s154_s7 = scalar_lea.sflag [#allocation6], %s642_s5 }
  0x2e   : > { %s646_s14 = scalar_lea.vmem [#allocation5], %s325_s6 }
  0x2f   : > { %500 = dma.done.wait (%p586_p6), %s154_s7, 2048  }
  0x30   : > { %502 = vsyncadd (%p586_p6), %s154_s7, 4294965248  ;;  %v196_v0 = vld [vmem:[%s646_s14 + $0x78] sm:$0xff]  ;;  %v195_v1 = vld [vmem:[%s646_s14 + $0x70] sm:$0xff]  ;;  %s326_s20 = sshll.u32 %s642_s5, 2  ;;  %s328_s23 = sshll.u32 %s562_s13, 2 }
  0x31   : > { %197 = vmatpush.xpose.msra.mxu0 %v196_v0  ;;  %v194_v2 = vld [vmem:[%s646_s14 + $0x68] sm:$0xff]  ;;  %v193_v3 = vld [vmem:[%s646_s14 + $0x60] sm:$0xff]  ;;  %v192_v4 = vld [vmem:[%s646_s14 + $0x58] sm:$0xff]  ;;  %s229_s16 = scalar_lea.hbm %s704_s2, %s328_s23  ;;  %s178_s17 = scalar_lea.vmem [#allocation7], %s326_s20 }
  0x32   : > { %v191_v5 = vld [vmem:[%s646_s14 + $0x50] sm:$0xff]  ;;  %v190_v6 = vld [vmem:[%s646_s14 + $0x48] sm:$0xff]  ;;  %v189_v7 = vld [vmem:[%s646_s14 + $0x40] sm:$0xff]  ;;  %s231_s24 = sshll.u32 %s178_s17, 4  ;;  %s233_s19 = sshll.u32 %s229_s16, 4  ;;  %s232_s24 = int_to_ptr.vmem [resolvable:$true] %s231_s24  ;;  %s234_s19 = int_to_ptr.hbm [resolvable:$true] %s233_s19 }
  0x33   : > { %v188_v8 = vld [vmem:[%s646_s14 + $0x38] sm:$0xff]  ;;  %v187_v9 = vld [vmem:[%s646_s14 + $0x30] sm:$0xff]  ;;  %v186_v10 = vld [vmem:[%s646_s14 + $0x28] sm:$0xff]  ;;  %s219_s25 = scalar_lea.sflag [#allocation4], %s642_s5  ;;  %s465_s26 = sshra.s32 %s234_s19, 4  ;;  %s466_s26 = int_to_ptr.hbm [resolvable:$true] %s465_s26 }
  0x34   : > { %v185_v11 = vld [vmem:[%s646_s14 + $0x20] sm:$0xff]  ;;  %v184_v12 = vld [vmem:[%s646_s14 + $0x18] sm:$0xff]  ;;  %v183_v13 = vld [vmem:[%s646_s14 + $0x10] sm:$0xff]  ;;  %s467_s27 = scalar_lea.hbm %s466_s26, 4  ;;  %s471_s4 = scalar_lea.hbm %s704_s2, 8 }
  0x35   : > { %198 = vmatpush.xpose.msra.mxu0 %v195_v1  ;;  %v182_v14 = vld [vmem:[%s646_s14 + $0x8] sm:$0xff]  ;;  %v181_v15 = vld [vmem:[%s646_s14] sm:$0xff]  ;;  %v180_v16 = vld [vmem:[#allocation2] sm:$0xf]  ;;  %p468_p4 = scmp.ne.s32.totalorder %s466_s26, %s467_s27  ;;  %p472_p0 = scmp.lt.s32.totalorder %s466_s26, %s704_s2 }
  0x36   : > { %p473_p7 = scmp.lt.s32.totalorder %s471_s4, %s467_s27 }
  0x37   : > { %p469_p6 = pnand %p468_p4, %p593_p11 }
  0x38   : > { %p474_p5 = por %p473_p7, %p472_p0 }
  0x39   : > { %199 = vmatpush.xpose.msra.mxu0 %v194_v2  ;;  %p470_p13 = pneg %p469_p6 }
  0x3b   : > { %p475_p8 = pnand %p474_p5, %p470_p13 }
  0x3d   : > { %200 = vmatpush.xpose.msra.mxu0 %v193_v3 }
  0x41   : > { %201 = vmatpush.xpose.msra.mxu0 %v192_v4 }
  0x45   : > { %202 = vmatpush.xpose.msra.mxu0 %v191_v5 }
  0x49   : > { %203 = vmatpush.xpose.msra.mxu0 %v190_v6 }
  0x4d   : > { %204 = vmatpush.xpose.msra.mxu0 %v189_v7 }
  0x51   : > { %205 = vmatpush.xpose.msra.mxu0 %v188_v8 }
  0x55   : > { %206 = vmatpush.xpose.msra.mxu0 %v187_v9 }
  0x59   : > { %207 = vmatpush.xpose.msra.mxu0 %v186_v10 }
  0x5d   : > { %208 = vmatpush.xpose.msra.mxu0 %v185_v11 }
  0x61   : > { %209 = vmatpush.xpose.msra.mxu0 %v184_v12 }
  0x65   : > { %210 = vmatpush.xpose.msra.mxu0 %v183_v13 }
  0x69   : > { %211 = vmatpush.xpose.msra.mxu0 %v182_v14 }
  0x6d   : > { %212 = vmatpush.xpose.msra.mxu0 %v181_v15 }
  0x70   : > { %213 = vmatmul.f32.vlgmr.msra.gmra.mxu0 %v180_v16 }
  0xed   : > { %v214_v17 = vpop.f32.mrf.mxu0 }
  0xee   : > { %217 = vst [vmem:[%s178_s17] sm:$0xf] %v214_v17 }
  0xef   : > { %478 = shalt.err (!%p475_p8)
}
  0xf0   : > { %338 = dma.vmem_to_hbm [thread:$0]  (%p593_p11), %s232_s24, 64, %s234_s19, %s219_s25  }
  0xf1 PF: > { %s245_s5 = sand.u32 1, %s509_s9   ;;  %p711_p9 = scmp.ge.s32.totalorder %s521_s12, 2 }
  0xf2   : > { %s246_s6 = scalar_lea.sflag [#allocation4], %s245_s5 }
  0xf3   : > { %p349_p10 = pnand %p711_p9, %p597_p12 }
  0xf5   : > { %p350_p1 = pneg %p349_p10 }
  0xf7   : > { %504 = dma.done.wait (%p350_p1), %s246_s6, 64  }
  0xf8   : > { %506 = vsyncadd (%p350_p1), %s246_s6, 4294967232  ;;  %p16_p2 = scmp.ge.s32.totalorder %s566_s15, 4   ;;  %s712_s9 = smov %s513_s10 }
  0xf9   : > { %s713_s10 = smov %s517_s11  ;;  %s714_s11 = smov %s578_s18 }
  0xfa   : > { %s715_s12 = smov %s566_s15  ;;  %18 = sbr.rel (!%p16_p2) target bundleno = 6 (0x6), region = 78 }
  0xff   :  { %252 = vsyncpa [#allocation3], 1 }
 0x100   :  { %254 = vsyncpa [#allocation3 + $0x1], 1 }
 0x101   :  { %255 = vsyncpa [#allocation6], 1 }
 0x102   :  { %257 = vsyncpa [#allocation6 + $0x1], 1 }
 0x103   :  { %258 = vsyncpa [#allocation4], 1 }
 0x104   :  { %260 = vsyncpa [#allocation4 + $0x1], 1 }

</bundles_post_ra>
